<compile_context>
chip_gen: v7x
topology: tpu7x:2x2x1
jax: 0.10.0
libtpu: 0.0.40
codegen_flags: <defaults>
</compile_context>

<pallas_src>
import jax
import jax.numpy as jnp
from jax.experimental import pallas as pl
from jax.experimental.pallas import tpu as pltpu

_SUB, _LANE = 8, 128
_BLOCK_BUDGET = 4 * 1024 * 1024      # bytes per operand block (res / x / out each)
_VMEM_LIMIT = 32 * 1024 * 1024       # explicit scoped-VMEM limit, safe on v5e..v7x


def _round_up(n, m):
    return ((n + m - 1) // m) * m


def _choose_tiles(batch, rows, lanes, itemsize):
    """Pick (tile_b, tile_r) so a single operand block fits _BLOCK_BUDGET.
    No divisibility requirements: the grid uses pl.cdiv and the last (partial)
    block is handled by Pallas's masked stores."""
    def blk_bytes(tb, tr):
        return tb * _round_up(tr, _SUB) * lanes * itemsize

    if blk_bytes(1, rows) <= _BLOCK_BUDGET:
        tile_r = rows
        tile_b = min(batch, max(1, _BLOCK_BUDGET // blk_bytes(1, rows)))
        return tile_b, tile_r
    # Large sample: one sample per step, tile over rows in multiples of 8 sublanes.
    tile_r = max(_SUB, (_BLOCK_BUDGET // (lanes * itemsize)) // _SUB * _SUB)
    return 1, tile_r


# --------------------------------------------------------------------------------
# Kernels
# --------------------------------------------------------------------------------
def _residual_drop_path_kernel(res_ref, x_ref, s_ref, o_ref):
    # res/x/o: (tile_b, tile_r, lanes) blocks; s: (tile_b, 1, 128) f32 per-sample
    # scale (0 or 1/keep_prob).  o = residual + branch * scale, computed in f32.
    s = s_ref[...][:, :, :1]                                   # (tile_b, 1, 1) f32
    o_ref[...] = (res_ref[...].astype(jnp.float32)
                  + x_ref[...].astype(jnp.float32) * s).astype(o_ref.dtype)


def _drop_path_kernel(x_ref, s_ref, o_ref):
    s = s_ref[...][:, :, :1]
    o_ref[...] = (x_ref[...].astype(jnp.float32) * s).astype(o_ref.dtype)


# --------------------------------------------------------------------------------
# Wrapper
# --------------------------------------------------------------------------------
def _drop_path_core(x, residual, key, drop_prob, training, scale_by_keep):
    fused = residual is not None
    if fused:
        assert residual.shape == x.shape and residual.dtype == x.dtype
    if drop_prob == 0.0 or not training:
        return (residual + x) if fused else x
    if key is None:
        raise ValueError("drop_path: a PRNG key is required when training with drop_prob > 0")

    keep_prob = 1.0 - drop_prob
    batch = int(x.shape[0])

    # Per-sample Bernoulli keep decision, drawn wrapper-side (as in the torch ref).
    keep = jax.random.bernoulli(key, p=keep_prob, shape=(batch,))
    scale = keep.astype(jnp.float32)
    if scale_by_keep and keep_prob > 0.0:
        scale = scale / keep_prob          # kept in f32; only the product is cast

    # ---- lane-dense (batch, rows, lanes) view ------------------------------------
    if x.ndim >= 2 and int(x.shape[-1]) % _LANE == 0:
        lanes = int(x.shape[-1])
        rows = 1
        for d in x.shape[1:-1]:
            rows *= int(d)
        rows = max(rows, 1)
        pad, flat = 0, rows * lanes
        x3 = x.reshape(batch, rows, lanes)
        res3 = residual.reshape(batch, rows, lanes) if fused else None
    else:
        flat = 1
        for d in x.shape[1:]:
            flat *= int(d)
        flat = max(flat, 1)
        padded = _round_up(flat, _LANE)
        lanes = next(c for c in (1024, 512, 256, 128) if padded % c == 0)
        rows = padded // lanes
        pad = padded - flat

        # TODO(synk): handle the ragged tail with an in-kernel masked store instead of
        # materializing padded copies (extra HBM pass on this uncommon path).
        def _prep(t):
            t2 = t.reshape(batch, flat)
            if pad:
                t2 = jnp.pad(t2, ((0, 0), (0, pad)))
            return t2.reshape(batch, rows, lanes)

        x3 = _prep(x)
        res3 = _prep(residual) if fused else None

    itemsize = jnp.dtype(x.dtype).itemsize
    tile_b, tile_r = _choose_tiles(batch, rows, lanes, itemsize)
    grid_b, grid_r = pl.cdiv(batch, tile_b), pl.cdiv(rows, tile_r)
    if grid_b * grid_r == 1 and batch >= 2:
        # v7x megacore: keep >= 2 grid steps so both TensorCores get work.
        tile_b = (batch + 1) // 2
        grid_b = pl.cdiv(batch, tile_b)

    s3 = jnp.broadcast_to(scale[:, None, None].astype(jnp.float32), (batch, 1, _LANE))

    data_spec = pl.BlockSpec((tile_b, tile_r, lanes), lambda i, r: (i, r, 0))
    scale_spec = pl.BlockSpec((tile_b, 1, _LANE), lambda i, r: (i, 0, 0))
    params = pltpu.CompilerParams(dimension_semantics=("parallel", "parallel"),
                                  vmem_limit_bytes=_VMEM_LIMIT)
    out_shape = jax.ShapeDtypeStruct((batch, rows, lanes), x.dtype)

    if fused:
        out = pl.pallas_call(
            _residual_drop_path_kernel, out_shape=out_shape, grid=(grid_b, grid_r),
            in_specs=[data_spec, data_spec, scale_spec], out_specs=data_spec,
            compiler_params=params,
        )(res3, x3, s3)
    else:
        out = pl.pallas_call(
            _drop_path_kernel, out_shape=out_shape, grid=(grid_b, grid_r),
            in_specs=[data_spec, scale_spec], out_specs=data_spec,
            compiler_params=params,
        )(x3, s3)

    if pad:
        out = out.reshape(batch, rows * lanes)[:, :flat]
    return out.reshape(x.shape)


def drop_path_pallas(x, key, drop_prob=0.0, training=False, scale_by_keep=True):
    """Functional equivalent of timm's drop_path(), Pallas-backed."""
    return _drop_path_core(x, None, key, drop_prob, training, scale_by_keep)


def residual_drop_path(residual, x, key, drop_prob=0.0, training=False, scale_by_keep=True):
    """Pallas-fused `residual + drop_path(x)` — the `x = x + drop_path(branch)`
    pattern in Block.forward, in a single HBM pass."""
    return _drop_path_core(x, residual, key, drop_prob, training, scale_by_keep)


def _residual_drop_path_ref(residual, x, key, drop_prob=0.0, training=False,
                            scale_by_keep=True):
    """Pure-jnp reference (same Bernoulli draw as the Pallas path)."""
    if drop_prob == 0.0 or not training:
        return residual + x
    keep_prob = 1.0 - drop_prob
    keep = jax.random.bernoulli(key, p=keep_prob, shape=(x.shape[0],)).astype(jnp.float32)
    scale = keep / keep_prob if (scale_by_keep and keep_prob > 0.0) else keep
    scale = scale.reshape((x.shape[0],) + (1,) * (x.ndim - 1))
    return (residual.astype(jnp.float32)
            + x.astype(jnp.float32) * scale).astype(x.dtype)


class DropPath:
    """Drop paths (Stochastic Depth) per sample, Pallas-backed."""

    def __init__(self, drop_prob: float = 0.0, scale_by_keep: bool = True):
        self.drop_prob = float(drop_prob)
        self.scale_by_keep = scale_by_keep

    def __call__(self, x, *, key=None, training=False):
        return drop_path_pallas(x, key, self.drop_prob, training=training,
                                scale_by_keep=self.scale_by_keep)


# --------------------------------------------------------------------------------
# ViT Block (JAX).  Attention / Mlp / LayerNorm / LayerScale run through XLA;
# the two residual + drop_path connections run through the fused Pallas kernel.
# --------------------------------------------------------------------------------
class Block:
    def __init__(self, dim, num_heads, mlp_ratio=4.0, qkv_bias=False,
                 init_values=None, drop_path=0.0, key=None, dtype=jnp.float32):
        assert dim % num_heads == 0
        if key is None:
            key = jax.random.PRNGKey(0)
        k = jax.random.split(key, 4)
        hidden = int(dim * mlp_ratio)
        s = 0.02
        self.num_heads = num_heads
        self.head_dim = dim // num_heads
        self.scale = self.head_dim ** -0.5
        self.drop_prob = float(drop_path)

        self.w_qkv = (s * jax.random.normal(k[0], (dim, 3 * dim))).astype(dtype)
        self.b_qkv = jnp.zeros((3 * dim,), dtype) if qkv_bias else None
        self.w_proj = (s * jax.random.normal(k[1], (dim, dim))).astype(dtype)
        self.b_proj = jnp.zeros((dim,), dtype)
        self.w_fc1 = (s * jax.random.normal(k[2], (dim, hidden))).astype(dtype)
        self.b_fc1 = jnp.zeros((hidden,), dtype)
        self.w_fc2 = (s * jax.random.normal(k[3], (hidden, dim))).astype(dtype)
        self.b_fc2 = jnp.zeros((dim,), dtype)
        self.norm1_g = jnp.ones((dim,), dtype)
        self.norm1_b = jnp.zeros((dim,), dtype)
        self.norm2_g = jnp.ones((dim,), dtype)
        self.norm2_b = jnp.zeros((dim,), dtype)
        self.ls1 = (init_values * jnp.ones((dim,), dtype)) if init_values else None
        self.ls2 = (init_values * jnp.ones((dim,), dtype)) if init_values else None

    @staticmethod
    def _ln(x, g, b, eps=1e-5):
        x32 = x.astype(jnp.float32)
        mu = jnp.mean(x32, axis=-1, keepdims=True)
        var = jnp.mean(jnp.square(x32 - mu), axis=-1, keepdims=True)
        y = (x32 - mu) * jax.lax.rsqrt(var + eps)
        return (y * g + b).astype(x.dtype)

    def _attn(self, x):
        B, N, C = x.shape
        qkv = jnp.dot(x, self.w_qkv)
        if self.b_qkv is not None:
            qkv = qkv + self.b_qkv
        qkv = qkv.reshape(B, N, 3, self.num_heads, self.head_dim)
        qkv = jnp.transpose(qkv, (2, 0, 3, 1, 4))            # (3, B, H, N, hd)
        q, k, v = qkv[0], qkv[1], qkv[2]
        attn = jnp.einsum('bhnd,bhmd->bhnm', q * self.scale, k)
        attn = jax.nn.softmax(attn, axis=-1)
        out = jnp.einsum('bhnm,bhmd->bhnd', attn, v)
        out = jnp.transpose(out, (0, 2, 1, 3)).reshape(B, N, C)
        return jnp.dot(out, self.w_proj) + self.b_proj

    def _mlp(self, x):
        h = jnp.dot(x, self.w_fc1) + self.b_fc1
        h = jax.nn.gelu(h, approximate=False)
        return jnp.dot(h, self.w_fc2) + self.b_fc2

    def __call__(self, x, *, key=None, training=False, use_pallas=True):
        p = self.drop_prob
        if training and p > 0.0:
            if key is None:
                raise ValueError("Block: a PRNG key is required when training with drop_path > 0")
            k1, k2 = jax.random.split(key)
        else:
            k1 = k2 = None
        dp = residual_drop_path if use_pallas else _residual_drop_path_ref

        branch = self._attn(self._ln(x, self.norm1_g, self.norm1_b))
        if self.ls1 is not None:
            branch = branch * self.ls1
        x = dp(x, branch, k1, p, training=training)

        branch = self._mlp(self._ln(x, self.norm2_g, self.norm2_b))
        if self.ls2 is not None:
            branch = branch * self.ls2
        x = dp(x, branch, k2, p, training=training)
        return x


if __name__ == "__main__":
    root = jax.random.PRNGKey(0)
    k_blk, k_x, k_res, k_br, k_dp, k_bf = jax.random.split(root, 6)

    # ---- Block forward, (B, N, C) = (2, 8, 32), 4 heads -------------------------
    B, N, C = 2, 8, 32
    x = jax.random.normal(k_x, (B, N, C), dtype=jnp.float32)
    blk = Block(dim=C, num_heads=4, mlp_ratio=2.0, qkv_bias=True,
                init_values=1e-5, drop_path=0.25, key=k_blk)

    dp_key = jax.random.PRNGKey(42)
    y = jax.block_until_ready(blk(x, key=dp_key, training=True))
    y_ref = blk(x, key=dp_key, training=True, use_pallas=False)
    assert y.shape == x.shape
    assert jnp.allclose(y, y_ref, rtol=1e-5, atol=1e-5), "Block training-mode mismatch"

    y_eval = jax.block_until_ready(blk(x, training=False))
    y_eval_ref = blk(x, training=False, use_pallas=False)
    assert jnp.allclose(y_eval, y_eval_ref, rtol=1e-5, atol=1e-5), "Block eval-mode mismatch"

    # ---- fused residual+drop_path, lane-dense path, odd batch (partial block) ---
    res = jax.random.normal(k_res, (3, 16, 128), dtype=jnp.float32)
    br = jax.random.normal(k_br, (3, 16, 128), dtype=jnp.float32)
    kk = jax.random.PRNGKey(7)
    out = jax.block_until_ready(residual_drop_path(res, br, kk, 0.5, training=True))
    ref = _residual_drop_path_ref(res, br, kk, 0.5, training=True)
    assert jnp.allclose(out, ref, rtol=1e-5, atol=1e-6), "fused lane-dense mismatch"

    # ---- standalone DropPath, ragged trailing dim (48 not a multiple of 128) ----
    xd = jax.random.normal(k_dp, (4, 7, 48), dtype=jnp.float32)
    mod = DropPath(0.25)
    yd = jax.block_until_ready(mod(xd, key=jax.random.PRNGKey(3), training=True))
    keep = jax.random.bernoulli(jax.random.PRNGKey(3), 0.75, (4,)).astype(jnp.float32)
    sd = (keep / 0.75)[:, None, None]
    assert jnp.allclose(yd, xd * sd, rtol=1e-5, atol=1e-6), "ragged DropPath mismatch"

    # ---- bf16 path ---------------------------------------------------------------
    xb = jax.random.normal(k_bf, (2, 8, 128)).astype(jnp.bfloat16)
    rb = jnp.zeros_like(xb)
    ob = jax.block_until_ready(
        residual_drop_path(rb, xb, jax.random.PRNGKey(9), 0.25, training=True))
    refb = _residual_drop_path_ref(rb, xb, jax.random.PRNGKey(9), 0.25, training=True)
    assert jnp.allclose(ob.astype(jnp.float32), refb.astype(jnp.float32),
                        rtol=2e-2, atol=2e-2), "bf16 mismatch"

    # ---- eval / p=0 identity paths -----------------------------------------------
    assert bool(jnp.all(mod(xd, key=jax.random.PRNGKey(3), training=False) == xd))
    assert bool(jnp.all(DropPath(0.0)(xd, key=jax.random.PRNGKey(3), training=True) == xd))

    print("KERNEL_OK")
</pallas_src>

<mosaic_0001>
module attributes {stable_mosaic.version = 11 : i64} {
  func.func @_residual_drop_path_kernel(%arg0: i32, %arg1: i32, %arg2: memref<1x1x256xf32, #tpu.memory_space<vmem>>, %arg3: memref<1x1x256xf32, #tpu.memory_space<vmem>>, %arg4: memref<1x1x128xf32, #tpu.memory_space<vmem>>, %arg5: memref<1x1x256xf32, #tpu.memory_space<vmem>>) attributes {dimension_semantics = [#tpu.dimension_semantics<parallel>, #tpu.dimension_semantics<parallel>], iteration_bounds = array<i64: 2, 1>, scalar_prefetch = 0 : i64, scratch_operands = 0 : i64, tpu.core_type = #tpu.core_type<tc>, window_params = [{transform_indices = @transform_0, window_bounds = array<i64: 1, 1, 256>}, {transform_indices = @transform_1, window_bounds = array<i64: 1, 1, 256>}, {transform_indices = @transform_2, window_bounds = array<i64: 1, 1, 128>}, {transform_indices = @transform_3, window_bounds = array<i64: 1, 1, 256>}]} {
    %c0 = arith.constant 0 : index
    %c0_0 = arith.constant 0 : index
    %c0_1 = arith.constant 0 : index
    %0 = vector.load %arg4[%c0, %c0_0, %c0_1] : memref<1x1x128xf32, #tpu.memory_space<vmem>>, vector<1x1x128xf32>
    %1 = vector.extract_strided_slice %0 {offsets = [0, 0, 0], sizes = [1, 1, 1], strides = [1, 1, 1]} : vector<1x1x128xf32> to vector<1x1x1xf32>
    %c0_2 = arith.constant 0 : index
    %c0_3 = arith.constant 0 : index
    %c0_4 = arith.constant 0 : index
    %2 = vector.load %arg2[%c0_2, %c0_3, %c0_4] : memref<1x1x256xf32, #tpu.memory_space<vmem>>, vector<1x1x256xf32>
    %c0_5 = arith.constant 0 : index
    %c0_6 = arith.constant 0 : index
    %c0_7 = arith.constant 0 : index
    %3 = vector.load %arg3[%c0_5, %c0_6, %c0_7] : memref<1x1x256xf32, #tpu.memory_space<vmem>>, vector<1x1x256xf32>
    %4 = vector.broadcast %1 : vector<1x1x1xf32> to vector<1x1x256xf32>
    %5 = arith.mulf %3, %4 : vector<1x1x256xf32>
    %6 = arith.addf %2, %5 : vector<1x1x256xf32>
    %c0_8 = arith.constant 0 : index
    %c0_9 = arith.constant 0 : index
    %c0_10 = arith.constant 0 : index
    %7 = vector.load %arg5[%c0_8, %c0_9, %c0_10] : memref<1x1x256xf32, #tpu.memory_space<vmem>>, vector<1x1x256xf32>
    tpu.vector_store %arg5[%c0_8, %c0_9, %c0_10], %6 {strides = array<i32>} : memref<1x1x256xf32, #tpu.memory_space<vmem>>, vector<1x1x256xf32>,
    return
  }
  func.func @transform_0(%arg0: i32, %arg1: i32) -> (i32, i32, i32) {
    %c0_i32 = arith.constant 0 : i32
    %c0_i32_0 = arith.constant 0 : i32
    return %arg0, %arg1, %c0_i32 : i32, i32, i32
  }
  func.func @transform_1(%arg0: i32, %arg1: i32) -> (i32, i32, i32) {
    %c0_i32 = arith.constant 0 : i32
    %c0_i32_0 = arith.constant 0 : i32
    return %arg0, %arg1, %c0_i32 : i32, i32, i32
  }
  func.func @transform_2(%arg0: i32, %arg1: i32) -> (i32, i32, i32) {
    %c0_i32 = arith.constant 0 : i32
    %c0_i32_0 = arith.constant 0 : i32
    %c0_i32_1 = arith.constant 0 : i32
    return %arg0, %c0_i32, %c0_i32_0 : i32, i32, i32
  }
  func.func @transform_3(%arg0: i32, %arg1: i32) -> (i32, i32, i32) {
    %c0_i32 = arith.constant 0 : i32
    %c0_i32_0 = arith.constant 0 : i32
    return %arg0, %arg1, %c0_i32 : i32, i32, i32
  }
}

</mosaic_0001>

<bundles_post_ra>
// kernel: tpu_custom_call.1
= control target key start
LH: loop header
LB: loop body
LE: loop exit
PB: predicated region body
PF: predicated region fallthrough
CT: control target
= control target key end

     0   :  { %8 = vsyncpa [#allocation3], 0  ;;  %s909_s0 = inlined_call_operand.hbm [shape: f32[2,1,256], index: 0, kind: input, shape index: {}]   ;;  %s910_s1 = inlined_call_operand.hbm [shape: f32[2,1,256], index: 1, kind: input, shape index: {}]   ;;  %s911_s2 = inlined_call_operand.vmem [shape: f32[2,1,128], index: 2, kind: input, shape index: {}]   ;;  %s912_s3 = inlined_call_operand.hbm [shape: f32[2,1,256], index: 3, kind: output, shape index: {}]  }
   0x1   :  { %10 = vsyncpa [#allocation3 + $0x1], 0 }
   0x2   :  { %11 = vsyncpa [#allocation6], 0 }
   0x3   :  { %13 = vsyncpa [#allocation6 + $0x1], 0 }
   0x4   :  { %14 = vsyncpa [#allocation4], 0 }
   0x5   :  { %16 = vsyncpa [#allocation4 + $0x1], 0  ;;  %s679_s12 = smov 0   ;;  %s681_s13 = smov 0  }
   0x6   :  { %s683_s14 = smov 0   ;;  %s685_s15 = smov 0  }
   0x7   :  { %s687_s16 = smov 0   ;;  %s689_s17 = smov 0  }
   0x8 LB: > { %s416_s18 = sadd.s32 4294967295, %s653_s17   ;;  %s417_s19 = sadd.s32 4294967294, %s653_s17   ;;  %s653_s17 = sphi %s689_s17, %s22_s17   ;;  %s649_s16 = sphi %s687_s16, %s932_s16   ;;  %s645_s15 = sphi %s685_s15, %s931_s15   ;;  %s641_s14 = sphi %s683_s14, %s930_s14   ;;  %s637_s13 = sphi %s681_s13, %s929_s13   ;;  %s633_s12 = sphi %s679_s12, %s928_s12  }
   0x9   : > { %s34_s20 = sadd.s32 1, %s649_s16  ;;  %s43_s21 = sadd.s32 1, %s641_s14 }
   0xa   : > { %p36_p0 = scmp.ge.s32.totalorder %s34_s20, 2  ;;  %p50_p1 = scmp.ne.s32.totalorder %s641_s14, %s637_s13 }
   0xb   : > { %p51_p2 = scmp.eq.s32.totalorder %s653_s17, 0  ;;  %p56_p3 = scmp.ne.s32.totalorder %s637_s13, %s633_s12 }
   0xc   : > { %s934_s20 = smov (%p36_p0, %s34_s20), 0  ;;  %p57_p5 = scmp.eq.s32.totalorder %s416_s18, 0 }
   0xd   : > { %p720_p4 = por %p51_p2, %p50_p1  ;;  %s38_s23 = ssub.s32 %s649_s16, %s934_s20 }
   0xe   : > { %p136_p6 = scmp.eq.s32.totalorder %s416_s18, 1  ;;  %p41_p7 = scmp.eq.s32.totalorder %s38_s23, 0 }
   0xf   : > { %p726_p8 = por %p57_p5, %p56_p3  ;;  %p142_p10 = scmp.eq.s32.totalorder %s417_s19, 1 }
  0x10   : > { %p730_p9 = por %p136_p6, %p50_p1  ;;  %p455_p13 = scmp.lt.s32.totalorder %s653_s17, 2 }
  0x11   : > { %s916_s24 = scalar_select %p726_p8, 1, 0 }
  0x12   : > { %s917_s25 = scalar_select %p730_p9, 1, 0 }
  0x13   : > { %s735_s26 = scalar_select %p41_p7, %s641_s14, %s43_s21  }
  0x14   : > { %p737_p11 = por %p142_p10, %p56_p3  ;;  %s744_s28 = sand.u32 1, %s641_s14  }
  0x15   : > { %s420_s29 = sshll.u32 %s744_s28, 1  ;;  %s435_s30 = sshll.u32 %s649_s16, 5 }
  0x16   : > { %s918_s27 = scalar_select %p737_p11, 1, 0 }
  0x17   : > { %s753_s6 = scalar_lea.hbm %s909_s0, %s435_s30  ;;  %s166_s7 = scalar_lea.vmem [#allocation2], %s420_s29 }
  0x18   : > { %s176_s8 = sshll.u32 %s166_s7, 4  ;;  %p761_p0 = pnand %p455_p13, %p720_p4  ;;  %s757_s8 = int_to_ptr.vmem [resolvable:$true] %s176_s8 }
  0x19   : > { %s163_s10 = scalar_lea.sflag [#allocation3], %s744_s28  ;;  %s507_s11 = scalar_lea.hbm %s753_s6, 32 }
  0x1a   : > { %p508_p3 = scmp.ne.s32.totalorder %s753_s6, %s507_s11  ;;  %p509_p5 = pneg %p761_p0 }
  0x1b   : > { %s512_s21 = scalar_lea.hbm %s909_s0, 64  ;;  %p513_p4 = scmp.lt.u32.totalorder %s753_s6, %s909_s0 }
  0x1c   : > { %p510_p6 = pnand %p509_p5, %p508_p3  ;;  %p514_p10 = scmp.lt.u32.totalorder %s512_s21, %s507_s11 }
  0x1d   : > { %p516_p12 = scmp.lt.u32.totalorder %s507_s11, %s753_s6 }
  0x1e   : > { %p511_p7 = pneg %p510_p6  ;;  %p515_p13 = por %p514_p10, %p513_p4 }
  0x20   : > { %p517_p1 = por %p516_p12, %p515_p13 }
  0x22   : > { %p518_p2 = pnand %p517_p1, %p511_p7 }
  0x24   : > { %521 = shalt.err (!%p518_p2)
}
  0x25   : > { %s522_s4 = scalar_lea.vmem %s757_s8, 32  ;;  %s655_s5 = smov [#allocation2]  }
  0x26   : > { %p523_p3 = scmp.ne.s32.totalorder %s757_s8, %s522_s4  ;;  %s527_s7 = sshll.u32 %s655_s5, 4  ;;  %s528_s7 = int_to_ptr.vmem [resolvable:$false] %s527_s7 }
  0x27   : > { %s529_s18 = scalar_lea.vmem %s528_s7, 64  ;;  %p530_p9 = scmp.lt.s32.totalorder %s757_s8, %s528_s7 }
  0x28   : > { %p525_p6 = pnand %p523_p3, %p509_p5  ;;  %p531_p4 = scmp.lt.s32.totalorder %s529_s18, %s522_s4 }
  0x2a   : > { %p526_p11 = pneg %p525_p6  ;;  %p532_p10 = por %p531_p4, %p530_p9 }
  0x2c   : > { %p533_p12 = pnand %p532_p10, %p526_p11 }
  0x2e   : > { %536 = shalt.err (!%p533_p12)
}
  0x2f   : > { %447 = dma.hbm_to_vmem [thread:$0]  (!%p761_p0), %s753_s6, 32, %s757_s8, %s163_s10  }
  0x30   : > { %p920_p1 = scmp.lt.s32.totalorder %s653_s17, 3  ;;  %p921_p2 = scmp.ge.s32.totalorder %s653_s17, 1 }
  0x31   : > { %s806_s22 = scalar_lea.hbm %s910_s1, %s435_s30  ;;  %s187_s23 = scalar_lea.vmem [#allocation5], %s420_s29 }
  0x32   : > { %p797_p7 = pnand %p921_p2, %p920_p1  ;;  %s197_s4 = sshll.u32 %s187_s23, 4  ;;  %s198_s4 = int_to_ptr.vmem [resolvable:$true] %s197_s4 }
  0x33   : > { %s184_s6 = scalar_lea.sflag [#allocation6], %s744_s28  ;;  %s537_s8 = scalar_lea.hbm %s806_s22, 32 }
  0x34   : > { %s922_s11 = scalar_select %p797_p7, 1, 0 }
  0x35   : > { %p538_p9 = scmp.ne.s32.totalorder %s806_s22, %s537_s8  ;;  %s542_s30 = scalar_lea.hbm %s910_s1, 64 }
  0x36   : > { %p543_p3 = scmp.lt.u32.totalorder %s806_s22, %s910_s1  ;;  %p544_p6 = scmp.lt.u32.totalorder %s542_s30, %s537_s8 }
  0x37   : > { %p540_p11 = pnand %p538_p9, %p509_p5  ;;  %p546_p10 = scmp.lt.u32.totalorder %s537_s8, %s806_s22 }
  0x38   : > { %p545_p4 = por %p544_p6, %p543_p3 }
  0x39   : > { %p541_p13 = pneg %p540_p11 }
  0x3a   : > { %p547_p12 = por %p546_p10, %p545_p4 }
  0x3c   : > { %p548_p1 = pnand %p547_p12, %p541_p13 }
  0x3e   : > { %551 = shalt.err (!%p548_p1)
}
  0x3f   : > { %s552_s28 = scalar_lea.vmem %s198_s4, 32  ;;  %s656_s29 = smov [#allocation5]  }
  0x40   : > { %p553_p2 = scmp.ne.s32.totalorder %s198_s4, %s552_s28  ;;  %s557_s19 = sshll.u32 %s656_s29, 4  ;;  %s558_s19 = int_to_ptr.vmem [resolvable:$false] %s557_s19 }
  0x41   : > { %s559_s21 = scalar_lea.vmem %s558_s19, 64  ;;  %p560_p8 = scmp.lt.s32.totalorder %s198_s4, %s558_s19 }
  0x42   : > { %p555_p9 = pnand %p553_p2, %p509_p5  ;;  %p561_p7 = scmp.lt.s32.totalorder %s559_s21, %s552_s28 }
  0x44   : > { %p556_p11 = pneg %p555_p9  ;;  %p562_p3 = por %p561_p7, %p560_p8 }
  0x46   : > { %p563_p6 = pnand %p562_p3, %p556_p11 }
  0x48   : > { %566 = shalt.err (!%p563_p6)
}
  0x49   : > { %450 = dma.hbm_to_vmem [thread:$0]  (!%p761_p0), %s806_s22, 32, %s198_s4, %s184_s6  }
  0x4a   : > { %p923_p13 = scmp.ne.s32.totalorder %s922_s11, 0 }
  0x4b   : > { %s833_s23 = sand.u32 (!%p923_p13), 1, %s637_s13   ;;  %p924_p8 = scmp.ne.s32.totalorder (!%p923_p13), %s916_s24, 0 }
  0x4c   : > { %212 = sbr.rel (%p923_p13) target bundleno = 240 (0xf0), region = 32  ;;  %s836_s8 = sshll.u32 (!%p923_p13), %s833_s23, 1 }
  0x4d   : > { %s215_s10 = scalar_lea.sflag (!%p923_p13), [#allocation3], %s833_s23  ;;  %s218_s5 = scalar_lea.vmem (!%p923_p13), [#allocation2], %s836_s8 }
  0x53   : > { %620 = dma.done.wait (%p924_p8), %s215_s10, 32  }
  0x54   : > { %622 = vsyncadd (%p924_p8), %s215_s10, 4294967264  ;;  %s224_s9 = scalar_lea.sflag [#allocation6], %s833_s23  ;;  %s227_s11 = scalar_lea.vmem [#allocation5], %s836_s8 }
  0x55   : > { %624 = dma.done.wait (%p924_p8), %s224_s9, 32  }
  0x56   : > { %626 = vsyncadd (%p924_p8), %s224_s9, 4294967264  ;;  %p258_p0 = scmp.lt.s32.totalorder %s645_s15, 1  ;;  %v657_v0 = vmov 0   ;;  %v269_v2 = vlaneseq  ;;  %v263_v5 = vld [vmem:[%s227_s11] sm:$0x3]  ;;  %s437_s24 = sshll.u32 %s645_s15, 5 }
  0x57   : > { %506 = vset.pattern.permute.xlu0 %v657_v0  ;;  %v262_v8 = vld [vmem:[%s218_s5] sm:$0x3]  ;;  %s257_s7 = scalar_lea.vmem [#allocation7], %s836_s8  ;;  %s860_s19 = scalar_lea.hbm %s912_s3, %s437_s24 }
  0x58   : > { %s259_s22 = scalar_select %p258_p0, %s645_s15, 1  ;;  %v270_v3 = vshrl.u32 %v269_v2, 7  ;;  %vm277_vm0 = vcmp.lt.s32.totalorder %v269_v2, 256 }
  0x59   : > { %s297_s18 = sshll.u32 %s257_s7, 4  ;;  %s281_s21 = scalar_lea.sflag [#allocation4], %s833_s23  ;;  %s862_s18 = int_to_ptr.vmem [resolvable:$true] %s297_s18 }
  0x5a   : > { %s260_s30 = scalar_lea.vmem %s911_s2, %s259_s22  ;;  %v271_v4 = vsub.s32 0, %v270_v3  ;;  %s567_s10 = scalar_lea.vmem %s862_s18, 32 }
  0x5b   : > { %v261_v1 = vld [vmem:[%s260_s30] sm:$0x1]  ;;  %p568_p5 = scmp.ne.s32.totalorder %s862_s18, %s567_s10  ;;  %p925_p7 = scmp.ne.s32.totalorder %s917_s25, 0 }
  0x5c   : > { %266 = vperm.xlu0 %506, %v261_v1   ;;  %s658_s15 = smov [#allocation7]  }
  0x5d   : > { %p569_p4 = pnand %p568_p5, %p925_p7  ;;  %s571_s8 = sshll.u32 %s658_s15, 4  ;;  %s572_s8 = int_to_ptr.vmem [resolvable:$false] %s571_s8 }
  0x5e   : > { %s573_s5 = scalar_lea.vmem %s572_s8, 64  ;;  %p574_p12 = scmp.lt.s32.totalorder %s862_s18, %s572_s8 }
  0x5f   : > { %p570_p10 = pneg %p569_p4  ;;  %p575_p1 = scmp.lt.s32.totalorder %s573_s5, %s567_s10 }
  0x61   : > { %p576_p2 = por %p575_p1, %p574_p12 }
  0x63   : > { %p577_p9 = pnand %p576_p2, %p570_p10 }
  0xdb   : > { %v267_v6 = vpop.permute.xlu0 %266 }
  0xdc   : > { %v272_v7 = vrot.slane %v267_v6, %v271_v4 }
  0xde   : > { %v273_v9 = vmul.f32 %v272_v7, %v263_v5 }
  0xe0   : > { %v274_v10 = vadd.f32 %v273_v9, %v262_v8 }
  0xe2   : > { %279 = vst.msk [vmem:[%s257_s7] sm:$0x3] %vm277_vm0, %v274_v10 }
  0xe3   : > { %580 = shalt.err (!%p577_p9)
}
  0xe4   : > { %s581_s23 = scalar_lea.hbm %s860_s19, 32  ;;  %s585_s22 = scalar_lea.hbm %s912_s3, 64 }
  0xe5   : > { %p582_p11 = scmp.ne.s32.totalorder %s860_s19, %s581_s23  ;;  %p586_p13 = scmp.lt.u32.totalorder %s860_s19, %s912_s3 }
  0xe6   : > { %p587_p8 = scmp.lt.u32.totalorder %s585_s22, %s581_s23  ;;  %p589_p5 = scmp.lt.u32.totalorder %s581_s23, %s860_s19 }
  0xe7   : > { %p583_p3 = pnand %p582_p11, %p925_p7 }
  0xe8   : > { %p588_p0 = por %p587_p8, %p586_p13 }
  0xe9   : > { %p584_p6 = pneg %p583_p3 }
  0xea   : > { %p590_p4 = por %p589_p5, %p588_p0 }
  0xec   : > { %p591_p10 = pnand %p590_p4, %p584_p6 }
  0xee   : > { %594 = shalt.err (!%p591_p10)
}
  0xef   : > { %442 = dma.vmem_to_hbm [thread:$0]  (%p925_p7), %s862_s18, 32, %s860_s19, %s281_s21  }
  0xf0 PF: > { %s309_s30 = sand.u32 1, %s633_s12   ;;  %p926_p12 = scmp.ne.s32.totalorder %s918_s27, 0 }
  0xf1   : > { %p927_p1 = scmp.ge.s32.totalorder %s653_s17, 2  ;;  %s310_s24 = scalar_lea.sflag [#allocation4], %s309_s30 }
  0xf3   : > { %p452_p2 = pnand %p927_p1, %p926_p12 }
  0xf5   : > { %628 = dma.done.wait (!%p452_p2), %s310_s24, 32  }
  0xf6   : > { %630 = vsyncadd (!%p452_p2), %s310_s24, 4294967264  ;;  %s22_s17 = sadd.s32 1, %s653_s17   ;;  %s928_s12 = smov %s637_s13 }
  0xf7   : > { %p19_p9 = scmp.ge.s32.totalorder %s22_s17, 4   ;;  %s929_s13 = smov %s641_s14 }
  0xf8   : > { %s930_s14 = smov %s735_s26  ;;  %s931_s15 = smov %s649_s16 }
  0xf9   : > { %s932_s16 = smov %s934_s20  ;;  %21 = sbr.rel (!%p19_p9) target bundleno = 8 (0x8), region = 93 }
 0x100   :  { %315 = vsyncpa [#allocation3], 1 }
 0x101   :  { %317 = vsyncpa [#allocation3 + $0x1], 1 }
 0x102   :  { %318 = vsyncpa [#allocation6], 1 }
 0x103   :  { %320 = vsyncpa [#allocation6 + $0x1], 1 }
 0x104   :  { %321 = vsyncpa [#allocation4], 1 }
 0x105   :  { %323 = vsyncpa [#allocation4 + $0x1], 1 }

</bundles_post_ra>
